<compile_context>
chip_gen: v5e
topology: v5e:2x2
jax: 0.10.0
libtpu: 0.0.40
codegen_flags: <defaults>
</compile_context>

<pallas_src>
import functools

import jax
import jax.numpy as jnp
from jax import lax
from jax.experimental import pallas as pl
from jax.experimental.pallas import tpu as pltpu


# ----------------------------------------------------------------------------
# Kernel 1: K / V projections (computed exactly once per row tile).
# ----------------------------------------------------------------------------
def _kv_proj_kernel(x_ref, wk_ref, bk_ref, wv_ref, bv_ref, k_ref, v_ref):
    x = x_ref[...]                                               # (TP, D)
    k = (jnp.dot(x, wk_ref[...], preferred_element_type=jnp.float32)
         + bk_ref[...])                                          # (TP, d_key) f32
    v = (jnp.dot(x, wv_ref[...], preferred_element_type=jnp.float32)
         + bv_ref[...])                                          # (TP, D)     f32
    k_ref[...] = k.astype(k_ref.dtype)
    v_ref[...] = v.astype(v_ref.dtype)


# ----------------------------------------------------------------------------
# Kernel 2: flash-style attention with fused Q projection + online softmax.
# ----------------------------------------------------------------------------
def _flash_attn_kernel(xq_ref, k_ref, v_ref, wq_ref, bq_ref, o_ref,
                       q_sc, m_sc, l_sc, acc_sc):
    ki = pl.program_id(2)
    nk = pl.num_programs(2)

    @pl.when(ki == 0)
    def _init():
        # Q projection once per (b, q-tile); scale already folded into wq/bq.
        q = (jnp.dot(xq_ref[...], wq_ref[...],
                     preferred_element_type=jnp.float32) + bq_ref[...])
        q_sc[...] = q.astype(q_sc.dtype)        # stored in compute dtype (bf16)
        m_sc[...] = jnp.full_like(m_sc, -jnp.inf)
        l_sc[...] = jnp.zeros_like(l_sc)
        acc_sc[...] = jnp.zeros_like(acc_sc)

    k = k_ref[...]                                               # (TK, d_key)
    v = v_ref[...]                                               # (TK, D)

    # scores: contract last axes of q and k (no transpose); bf16 MXU, f32 acc.
    s = lax.dot_general(q_sc[...], k, (((1,), (1,)), ((), ())),
                        preferred_element_type=jnp.float32)      # (TQ, TK) f32

    m_prev = m_sc[...]
    m_new = jnp.maximum(m_prev, jnp.max(s, axis=-1, keepdims=True))
    alpha = jnp.exp(m_prev - m_new)
    p = jnp.exp(s - m_new)                                       # f32

    l_sc[...] = alpha * l_sc[...] + jnp.sum(p, axis=-1, keepdims=True)
    # P.V in compute dtype (bf16 by default), f32 accumulation.
    acc_sc[...] = alpha * acc_sc[...] + jnp.dot(
        p.astype(v.dtype), v, preferred_element_type=jnp.float32)
    m_sc[...] = m_new

    @pl.when(ki == nk - 1)
    def _finalize():
        # exact divide (review: approx reciprocal bought nothing here)
        o_ref[...] = (acc_sc[...] / l_sc[...]).astype(o_ref.dtype)


# ----------------------------------------------------------------------------
# Helpers
# ----------------------------------------------------------------------------
def _pick_tile(dim, target):
    """Largest multiple-of-8 divisor of `dim` that is <= target.

    Falls back to the full dimension only when the blowup is bounded; raises
    otherwise instead of silently exceeding the VMEM budget.
    """
    if dim <= target:
        return dim
    for t in range(target, 7, -1):
        if dim % t == 0 and t % 8 == 0:
            return t
    if dim <= 4 * target:
        return dim
    raise ValueError(
        f"sequence length {dim} has no multiple-of-8 tile <= {target}; "
        "pad the sequence to a multiple of 8/128 before calling self_attention.")


def _vmem_limit_bytes():
    """Per-chip VMEM budget with headroom (v5e/v6e ~108 MiB, v7x ~54 MiB)."""
    cap = 64 * 1024 * 1024
    try:
        info = pltpu.get_tpu_info()
        cap = int(getattr(info, "vmem_capacity_bytes", cap) or cap)
    except Exception:
        pass
    return int(min(cap * 0.85, 110 * 1024 * 1024))


# ----------------------------------------------------------------------------
# Wrapper
# ----------------------------------------------------------------------------
@functools.partial(jax.jit, static_argnames=("tq", "tk", "compute_dtype"))
def self_attention(x, wq, bq, wk, bk, wv, bv, *,
                   tq=None, tk=None, compute_dtype=jnp.bfloat16):
    """x: (B, S, d_model); wq/wk: (d_model, d_key); wv: (d_model, d_model).

    Weights are stored pre-transposed (in_features, out_features), so the
    kernels compute y = x @ W + b, matching nn.Linear's y = x @ W.T + b.
    compute_dtype (default bf16) is the MXU operand dtype; accumulation and
    the softmax statistics stay f32. Pass compute_dtype=None for full f32.
    """
    B, S, D = x.shape
    d_key = wq.shape[1]
    out_dtype = x.dtype
    mm_dtype = compute_dtype if compute_dtype is not None else x.dtype

    vmem_limit = _vmem_limit_bytes()
    big_vmem = vmem_limit >= 96 * 1024 * 1024
    # larger TQ preferentially (cuts the S/TQ re-read of x / k / v from HBM)
    tq = tq if tq is not None else (512 if big_vmem else 256)
    tk = tk if tk is not None else (1024 if big_vmem else 512)

    TQ = _pick_tile(S, tq)
    TK = _pick_tile(S, tk)
    TP = _pick_tile(S, tk)          # projection row tile

    # fold the attention scale into the Q projection (done once in XLA)
    scale = 1.0 / (float(d_key) ** 0.5)
    wq_s = (wq * scale).astype(mm_dtype)
    bq2 = (bq * scale).reshape(1, d_key).astype(jnp.float32)
    wk_c = wk.astype(mm_dtype)
    bk2 = bk.reshape(1, d_key).astype(jnp.float32)
    wv_c = wv.astype(mm_dtype)
    bv2 = bv.reshape(1, D).astype(jnp.float32)
    x_c = x.astype(mm_dtype)

    # ---- K / V projections: computed once, stored in compute dtype --------
    kv_grid_spec = pltpu.PrefetchScalarGridSpec(
        num_scalar_prefetch=0,
        grid=(B, S // TP),
        in_specs=[
            pl.BlockSpec((pl.Squeezed(), TP, D), lambda b, i: (b, i, 0)),   # x
            pl.BlockSpec((D, d_key), lambda b, i: (0, 0)),                  # wk
            pl.BlockSpec((1, d_key), lambda b, i: (0, 0)),                  # bk
            pl.BlockSpec((D, D), lambda b, i: (0, 0)),                      # wv
            pl.BlockSpec((1, D), lambda b, i: (0, 0)),                      # bv
        ],
        out_specs=[
            pl.BlockSpec((pl.Squeezed(), TP, d_key), lambda b, i: (b, i, 0)),
            pl.BlockSpec((pl.Squeezed(), TP, D), lambda b, i: (b, i, 0)),
        ],
    )
    k_all, v_all = pl.pallas_call(
        _kv_proj_kernel,
        out_shape=(jax.ShapeDtypeStruct((B, S, d_key), mm_dtype),
                   jax.ShapeDtypeStruct((B, S, D), mm_dtype)),
        grid_spec=kv_grid_spec,
        compiler_params=pltpu.CompilerParams(
            dimension_semantics=("parallel", "parallel"),
            vmem_limit_bytes=vmem_limit,
        ),
    )(x_c, wk_c, bk2, wv_c, bv2)

    # ---- flash attention with fused Q projection ---------------------------
    attn_grid_spec = pltpu.PrefetchScalarGridSpec(
        num_scalar_prefetch=0,
        grid=(B, S // TQ, S // TK),
        in_specs=[
            # x, viewed as the query tile (constant along ki)
            pl.BlockSpec((pl.Squeezed(), TQ, D), lambda b, qi, ki: (b, qi, 0)),
            # pre-projected K / V tiles
            pl.BlockSpec((pl.Squeezed(), TK, d_key), lambda b, qi, ki: (b, ki, 0)),
            pl.BlockSpec((pl.Squeezed(), TK, D), lambda b, qi, ki: (b, ki, 0)),
            pl.BlockSpec((D, d_key), lambda b, qi, ki: (0, 0)),   # wq (scaled)
            pl.BlockSpec((1, d_key), lambda b, qi, ki: (0, 0)),   # bq (scaled)
        ],
        out_specs=pl.BlockSpec((pl.Squeezed(), TQ, D),
                               lambda b, qi, ki: (b, qi, 0)),
        scratch_shapes=[
            pltpu.VMEM((TQ, d_key), mm_dtype),   # q tile (compute dtype)
            pltpu.VMEM((TQ, 1), jnp.float32),    # running max
            pltpu.VMEM((TQ, 1), jnp.float32),    # running denominator
            pltpu.VMEM((TQ, D), jnp.float32),    # output accumulator
        ],
    )

    return pl.pallas_call(
        _flash_attn_kernel,
        out_shape=jax.ShapeDtypeStruct((B, S, D), out_dtype),
        grid_spec=attn_grid_spec,
        compiler_params=pltpu.CompilerParams(
            dimension_semantics=("parallel", "parallel", "arbitrary"),
            vmem_limit_bytes=vmem_limit,
        ),
    )(x_c, k_all, v_all, wq_s, bq2)


# ----------------------------------------------------------------------------
# Pure-JAX reference (matches the PyTorch module)
# ----------------------------------------------------------------------------
def reference(x, wq, bq, wk, bk, wv, bv):
    q = x @ wq + bq
    k = x @ wk + bk
    v = x @ wv + bv
    a = q @ jnp.swapaxes(k, -2, -1) / (k.shape[-1] ** 0.5)
    a = jax.nn.softmax(a, axis=-1)
    return a @ v


if __name__ == "__main__":
    B, S, d_model, d_key = 2, 8, 32, 16

    key = jax.random.PRNGKey(0)
    ks = jax.random.split(key, 7)
    x = jax.random.normal(ks[0], (B, S, d_model), dtype=jnp.float32)

    # nn.Linear params (weight (out, in), bias (out,)) stored pre-transposed (in, out)
    wq = jax.random.normal(ks[1], (d_model, d_key), jnp.float32) * 0.1
    bq = jax.random.normal(ks[2], (d_key,), jnp.float32) * 0.1
    wk = jax.random.normal(ks[3], (d_model, d_key), jnp.float32) * 0.1
    bk = jax.random.normal(ks[4], (d_key,), jnp.float32) * 0.1
    wv = jax.random.normal(ks[5], (d_model, d_model), jnp.float32) * 0.1
    bv = jax.random.normal(ks[6], (d_model,), jnp.float32) * 0.1

    ref = reference(x, wq, bq, wk, bk, wv, bv)

    # default path: bf16 MXU operands, f32 accumulation
    out_bf16 = jax.block_until_ready(self_attention(x, wq, bq, wk, bk, wv, bv))
    assert out_bf16.shape == (B, S, d_model)
    assert jnp.allclose(out_bf16, ref, atol=5e-2, rtol=5e-2), \
        "bf16 kernel mismatch vs reference"

    # full-precision path
    out_f32 = jax.block_until_ready(
        self_attention(x, wq, bq, wk, bk, wv, bv, compute_dtype=None))
    assert jnp.allclose(out_f32, ref, atol=1e-4, rtol=1e-4), \
        "f32 kernel mismatch vs reference"

    print("KERNEL_OK")
</pallas_src>

<mosaic_0001>
module attributes {stable_mosaic.version = 11 : i64} {
  func.func @_kv_proj_kernel(%arg0: i32, %arg1: i32, %arg2: memref<1x8x32xbf16, #tpu.memory_space<vmem>>, %arg3: memref<32x16xbf16, #tpu.memory_space<vmem>>, %arg4: memref<1x16xf32, #tpu.memory_space<vmem>>, %arg5: memref<32x32xbf16, #tpu.memory_space<vmem>>, %arg6: memref<1x32xf32, #tpu.memory_space<vmem>>, %arg7: memref<1x8x16xbf16, #tpu.memory_space<vmem>>, %arg8: memref<1x8x32xbf16, #tpu.memory_space<vmem>>) attributes {dimension_semantics = [#tpu.dimension_semantics<parallel>, #tpu.dimension_semantics<parallel>], iteration_bounds = array<i64: 2, 1>, scalar_prefetch = 0 : i64, scratch_operands = 0 : i64, tpu.core_type = #tpu.core_type<tc>, window_params = [{transform_indices = @transform_0, window_bounds = array<i64: 1, 8, 32>}, {pipeline_mode = #tpu.pipeline_mode<synchronous>, transform_indices = @transform_1, window_bounds = array<i64: 32, 16>}, {pipeline_mode = #tpu.pipeline_mode<synchronous>, transform_indices = @transform_2, window_bounds = array<i64: 1, 16>}, {pipeline_mode = #tpu.pipeline_mode<synchronous>, transform_indices = @transform_3, window_bounds = array<i64: 32, 32>}, {pipeline_mode = #tpu.pipeline_mode<synchronous>, transform_indices = @transform_4, window_bounds = array<i64: 1, 32>}, {transform_indices = @transform_5, window_bounds = array<i64: 1, 8, 16>}, {transform_indices = @transform_6, window_bounds = array<i64: 1, 8, 32>}]} {
    %c0 = arith.constant 0 : index
    %c0_0 = arith.constant 0 : index
    %c0_1 = arith.constant 0 : index
    %0 = vector.load %arg2[%c0, %c0_0, %c0_1] : memref<1x8x32xbf16, #tpu.memory_space<vmem>>, vector<1x8x32xbf16>
    %1 = vector.shape_cast %0 : vector<1x8x32xbf16> to vector<8x32xbf16>
    %c0_2 = arith.constant 0 : index
    %c0_3 = arith.constant 0 : index
    %2 = vector.load %arg3[%c0_2, %c0_3] : memref<32x16xbf16, #tpu.memory_space<vmem>>, vector<32x16xbf16>
    %cst = arith.constant dense<0.000000e+00> : vector<8x16xf32>
    %3 = tpu.matmul %1, %2, %cst {dimension_numbers = #tpu.dot_dimension_numbers<[1], [0], [0], [1], [0, 0, 1, 1], [], []>} : vector<8x32xbf16>, vector<32x16xbf16>, vector<8x16xf32> -> vector<8x16xf32>
    %c0_4 = arith.constant 0 : index
    %c0_5 = arith.constant 0 : index
    %4 = vector.load %arg4[%c0_4, %c0_5] : memref<1x16xf32, #tpu.memory_space<vmem>>, vector<1x16xf32>
    %5 = vector.broadcast %4 : vector<1x16xf32> to vector<8x16xf32>
    %6 = arith.addf %3, %5 : vector<8x16xf32>
    %c0_6 = arith.constant 0 : index
    %c0_7 = arith.constant 0 : index
    %7 = vector.load %arg5[%c0_6, %c0_7] : memref<32x32xbf16, #tpu.memory_space<vmem>>, vector<32x32xbf16>
    %cst_8 = arith.constant dense<0.000000e+00> : vector<8x32xf32>
    %8 = tpu.matmul %1, %7, %cst_8 {dimension_numbers = #tpu.dot_dimension_numbers<[1], [0], [0], [1], [0, 0, 1, 1], [], []>} : vector<8x32xbf16>, vector<32x32xbf16>, vector<8x32xf32> -> vector<8x32xf32>
    %c0_9 = arith.constant 0 : index
    %c0_10 = arith.constant 0 : index
    %9 = vector.load %arg6[%c0_9, %c0_10] : memref<1x32xf32, #tpu.memory_space<vmem>>, vector<1x32xf32>
    %10 = vector.broadcast %9 : vector<1x32xf32> to vector<8x32xf32>
    %11 = arith.addf %8, %10 : vector<8x32xf32>
    %12 = arith.truncf %6 : vector<8x16xf32> to vector<8x16xbf16>
    %c0_11 = arith.constant 0 : index
    %c0_12 = arith.constant 0 : index
    %c0_13 = arith.constant 0 : index
    %13 = vector.load %arg7[%c0_11, %c0_12, %c0_13] : memref<1x8x16xbf16, #tpu.memory_space<vmem>>, vector<1x8x16xbf16>
    %14 = vector.shape_cast %13 : vector<1x8x16xbf16> to vector<8x16xbf16>
    %15 = vector.shape_cast %12 : vector<8x16xbf16> to vector<1x8x16xbf16>
    tpu.vector_store %arg7[%c0_11, %c0_12, %c0_13], %15 {strides = array<i32>} : memref<1x8x16xbf16, #tpu.memory_space<vmem>>, vector<1x8x16xbf16>,
    %16 = arith.truncf %11 : vector<8x32xf32> to vector<8x32xbf16>
    %c0_14 = arith.constant 0 : index
    %c0_15 = arith.constant 0 : index
    %c0_16 = arith.constant 0 : index
    %17 = vector.load %arg8[%c0_14, %c0_15, %c0_16] : memref<1x8x32xbf16, #tpu.memory_space<vmem>>, vector<1x8x32xbf16>
    %18 = vector.shape_cast %17 : vector<1x8x32xbf16> to vector<8x32xbf16>
    %19 = vector.shape_cast %16 : vector<8x32xbf16> to vector<1x8x32xbf16>
    tpu.vector_store %arg8[%c0_14, %c0_15, %c0_16], %19 {strides = array<i32>} : memref<1x8x32xbf16, #tpu.memory_space<vmem>>, vector<1x8x32xbf16>,
    return
  }
  func.func @transform_0(%arg0: i32, %arg1: i32) -> (i32, i32, i32) {
    %c0_i32 = arith.constant 0 : i32
    %c0_i32_0 = arith.constant 0 : i32
    return %arg0, %arg1, %c0_i32 : i32, i32, i32
  }
  func.func @transform_1(%arg0: i32, %arg1: i32) -> (i32, i32) {
    %c0_i32 = arith.constant 0 : i32
    %c0_i32_0 = arith.constant 0 : i32
    %c0_i32_1 = arith.constant 0 : i32
    return %c0_i32, %c0_i32_0 : i32, i32
  }
  func.func @transform_2(%arg0: i32, %arg1: i32) -> (i32, i32) {
    %c0_i32 = arith.constant 0 : i32
    %c0_i32_0 = arith.constant 0 : i32
    %c0_i32_1 = arith.constant 0 : i32
    return %c0_i32, %c0_i32_0 : i32, i32
  }
  func.func @transform_3(%arg0: i32, %arg1: i32) -> (i32, i32) {
    %c0_i32 = arith.constant 0 : i32
    %c0_i32_0 = arith.constant 0 : i32
    %c0_i32_1 = arith.constant 0 : i32
    return %c0_i32, %c0_i32_0 : i32, i32
  }
  func.func @transform_4(%arg0: i32, %arg1: i32) -> (i32, i32) {
    %c0_i32 = arith.constant 0 : i32
    %c0_i32_0 = arith.constant 0 : i32
    %c0_i32_1 = arith.constant 0 : i32
    return %c0_i32, %c0_i32_0 : i32, i32
  }
  func.func @transform_5(%arg0: i32, %arg1: i32) -> (i32, i32, i32) {
    %c0_i32 = arith.constant 0 : i32
    %c0_i32_0 = arith.constant 0 : i32
    return %arg0, %arg1, %c0_i32 : i32, i32, i32
  }
  func.func @transform_6(%arg0: i32, %arg1: i32) -> (i32, i32, i32) {
    %c0_i32 = arith.constant 0 : i32
    %c0_i32_0 = arith.constant 0 : i32
    return %arg0, %arg1, %c0_i32 : i32, i32, i32
  }
}

module attributes {stable_mosaic.version = 11 : i64} {
  func.func @_flash_attn_kernel(%arg0: i32, %arg1: i32, %arg2: i32, %arg3: memref<1x8x32xbf16, #tpu.memory_space<vmem>>, %arg4: memref<1x8x16xbf16, #tpu.memory_space<vmem>>, %arg5: memref<1x8x32xbf16, #tpu.memory_space<vmem>>, %arg6: memref<32x16xbf16, #tpu.memory_space<vmem>>, %arg7: memref<1x16xf32, #tpu.memory_space<vmem>>, %arg8: memref<1x8x32xf32, #tpu.memory_space<vmem>>, %arg9: memref<8x16xbf16, #tpu.memory_space<vmem>>, %arg10: memref<8x1xf32, #tpu.memory_space<vmem>>, %arg11: memref<8x1xf32, #tpu.memory_space<vmem>>, %arg12: memref<8x32xf32, #tpu.memory_space<vmem>>) attributes {dimension_semantics = [#tpu.dimension_semantics<parallel>, #tpu.dimension_semantics<parallel>, #tpu.dimension_semantics<arbitrary>], iteration_bounds = array<i64: 2, 1, 1>, scalar_prefetch = 0 : i64, scratch_operands = 4 : i64, tpu.core_type = #tpu.core_type<tc>, window_params = [{transform_indices = @transform_0, window_bounds = array<i64: 1, 8, 32>}, {transform_indices = @transform_1, window_bounds = array<i64: 1, 8, 16>}, {transform_indices = @transform_2, window_bounds = array<i64: 1, 8, 32>}, {pipeline_mode = #tpu.pipeline_mode<synchronous>, transform_indices = @transform_3, window_bounds = array<i64: 32, 16>}, {pipeline_mode = #tpu.pipeline_mode<synchronous>, transform_indices = @transform_4, window_bounds = array<i64: 1, 16>}, {transform_indices = @transform_5, window_bounds = array<i64: 1, 8, 32>}]} {
    %c0_i32 = arith.constant 0 : i32
    %0 = arith.cmpi eq, %arg2, %c0_i32 : i32
    %1 = arith.extui %0 : i1 to i32
    %c0_i32_0 = arith.constant 0 : i32
    %2 = arith.cmpi ne, %1, %c0_i32_0 : i32
    scf.if %2 {
      %c0_25 = arith.constant 0 : index
      %c0_26 = arith.constant 0 : index
      %c0_27 = arith.constant 0 : index
      %35 = vector.load %arg3[%c0_25, %c0_26, %c0_27] : memref<1x8x32xbf16, #tpu.memory_space<vmem>>, vector<1x8x32xbf16>
      %36 = vector.shape_cast %35 : vector<1x8x32xbf16> to vector<8x32xbf16>
      %c0_28 = arith.constant 0 : index
      %c0_29 = arith.constant 0 : index
      %37 = vector.load %arg6[%c0_28, %c0_29] : memref<32x16xbf16, #tpu.memory_space<vmem>>, vector<32x16xbf16>
      %cst_30 = arith.constant dense<0.000000e+00> : vector<8x16xf32>
      %38 = tpu.matmul %36, %37, %cst_30 {dimension_numbers = #tpu.dot_dimension_numbers<[1], [0], [0], [1], [0, 0, 1, 1], [], []>} : vector<8x32xbf16>, vector<32x16xbf16>, vector<8x16xf32> -> vector<8x16xf32>
      %c0_31 = arith.constant 0 : index
      %c0_32 = arith.constant 0 : index
      %39 = vector.load %arg7[%c0_31, %c0_32] : memref<1x16xf32, #tpu.memory_space<vmem>>, vector<1x16xf32>
      %40 = vector.broadcast %39 : vector<1x16xf32> to vector<8x16xf32>
      %41 = arith.addf %38, %40 : vector<8x16xf32>
      %42 = arith.truncf %41 : vector<8x16xf32> to vector<8x16xbf16>
      %c0_33 = arith.constant 0 : index
      %c0_34 = arith.constant 0 : index
      %43 = vector.load %arg9[%c0_33, %c0_34] : memref<8x16xbf16, #tpu.memory_space<vmem>>, vector<8x16xbf16>
      tpu.vector_store %arg9[%c0_33, %c0_34], %42 {strides = array<i32>} : memref<8x16xbf16, #tpu.memory_space<vmem>>, vector<8x16xbf16>,
      %cst_35 = arith.constant 0xFF800000 : f32
      %44 = vector.broadcast %cst_35 : f32 to vector<8x1xf32>
      %c0_36 = arith.constant 0 : index
      %c0_37 = arith.constant 0 : index
      %45 = vector.load %arg10[%c0_36, %c0_37] : memref<8x1xf32, #tpu.memory_space<vmem>>, vector<8x1xf32>
      tpu.vector_store %arg10[%c0_36, %c0_37], %44 {strides = array<i32>} : memref<8x1xf32, #tpu.memory_space<vmem>>, vector<8x1xf32>,
      %cst_38 = arith.constant 0.000000e+00 : f32
      %46 = vector.broadcast %cst_38 : f32 to vector<8x1xf32>
      %c0_39 = arith.constant 0 : index
      %c0_40 = arith.constant 0 : index
      %47 = vector.load %arg11[%c0_39, %c0_40] : memref<8x1xf32, #tpu.memory_space<vmem>>, vector<8x1xf32>
      tpu.vector_store %arg11[%c0_39, %c0_40], %46 {strides = array<i32>} : memref<8x1xf32, #tpu.memory_space<vmem>>, vector<8x1xf32>,
      %cst_41 = arith.constant 0.000000e+00 : f32
      %48 = vector.broadcast %cst_41 : f32 to vector<8x32xf32>
      %c0_42 = arith.constant 0 : index
      %c0_43 = arith.constant 0 : index
      %49 = vector.load %arg12[%c0_42, %c0_43] : memref<8x32xf32, #tpu.memory_space<vmem>>, vector<8x32xf32>
      tpu.vector_store %arg12[%c0_42, %c0_43], %48 {strides = array<i32>} : memref<8x32xf32, #tpu.memory_space<vmem>>, vector<8x32xf32>,
    } else {
    }
    %c0 = arith.constant 0 : index
    %c0_1 = arith.constant 0 : index
    %c0_2 = arith.constant 0 : index
    %3 = vector.load %arg4[%c0, %c0_1, %c0_2] : memref<1x8x16xbf16, #tpu.memory_space<vmem>>, vector<1x8x16xbf16>
    %4 = vector.shape_cast %3 : vector<1x8x16xbf16> to vector<8x16xbf16>
    %c0_3 = arith.constant 0 : index
    %c0_4 = arith.constant 0 : index
    %c0_5 = arith.constant 0 : index
    %5 = vector.load %arg5[%c0_3, %c0_4, %c0_5] : memref<1x8x32xbf16, #tpu.memory_space<vmem>>, vector<1x8x32xbf16>
    %6 = vector.shape_cast %5 : vector<1x8x32xbf16> to vector<8x32xbf16>
    %c0_6 = arith.constant 0 : index
    %c0_7 = arith.constant 0 : index
    %7 = vector.load %arg9[%c0_6, %c0_7] : memref<8x16xbf16, #tpu.memory_space<vmem>>, vector<8x16xbf16>
    %cst = arith.constant dense<0.000000e+00> : vector<8x8xf32>
    %8 = tpu.matmul %7, %4, %cst {dimension_numbers = #tpu.dot_dimension_numbers<[1], [1], [0], [0], [0, 0, 1, 0], [], []>} : vector<8x16xbf16>, vector<8x16xbf16>, vector<8x8xf32> -> vector<8x8xf32>
    %c0_8 = arith.constant 0 : index
    %c0_9 = arith.constant 0 : index
    %9 = vector.load %arg10[%c0_8, %c0_9] : memref<8x1xf32, #tpu.memory_space<vmem>>, vector<8x1xf32>
    %cst_10 = arith.constant dense<0xFF800000> : vector<8xf32>
    %10 = vector.multi_reduction <maximumf>, %8, %cst_10 [1] : vector<8x8xf32> to vector<8xf32>
    %11 = vector.shape_cast %10 : vector<8xf32> to vector<8x1xf32>
    %12 = arith.maximumf %9, %11 : vector<8x1xf32>
    %13 = arith.subf %9, %12 : vector<8x1xf32>
    %14 = math.exp %13 : vector<8x1xf32>
    %15 = vector.broadcast %12 : vector<8x1xf32> to vector<8x8xf32>
    %16 = arith.subf %8, %15 : vector<8x8xf32>
    %17 = math.exp %16 : vector<8x8xf32>
    %c0_11 = arith.constant 0 : index
    %c0_12 = arith.constant 0 : index
    %18 = vector.load %arg11[%c0_11, %c0_12] : memref<8x1xf32, #tpu.memory_space<vmem>>, vector<8x1xf32>
    %19 = arith.mulf %14, %18 : vector<8x1xf32>
    %cst_13 = arith.constant dense<0.000000e+00> : vector<8xf32>
    %20 = vector.multi_reduction <add>, %17, %cst_13 [1] : vector<8x8xf32> to vector<8xf32>
    %21 = vector.shape_cast %20 : vector<8xf32> to vector<8x1xf32>
    %22 = arith.addf %19, %21 : vector<8x1xf32>
    %c0_14 = arith.constant 0 : index
    %c0_15 = arith.constant 0 : index
    %23 = vector.load %arg11[%c0_14, %c0_15] : memref<8x1xf32, #tpu.memory_space<vmem>>, vector<8x1xf32>
    tpu.vector_store %arg11[%c0_14, %c0_15], %22 {strides = array<i32>} : memref<8x1xf32, #tpu.memory_space<vmem>>, vector<8x1xf32>,
    %c0_16 = arith.constant 0 : index
    %c0_17 = arith.constant 0 : index
    %24 = vector.load %arg12[%c0_16, %c0_17] : memref<8x32xf32, #tpu.memory_space<vmem>>, vector<8x32xf32>
    %25 = vector.broadcast %14 : vector<8x1xf32> to vector<8x32xf32>
    %26 = arith.mulf %25, %24 : vector<8x32xf32>
    %27 = arith.truncf %17 : vector<8x8xf32> to vector<8x8xbf16>
    %cst_18 = arith.constant dense<0.000000e+00> : vector<8x32xf32>
    %28 = tpu.matmul %27, %6, %cst_18 {dimension_numbers = #tpu.dot_dimension_numbers<[1], [0], [0], [1], [0, 0, 1, 1], [], []>} : vector<8x8xbf16>, vector<8x32xbf16>, vector<8x32xf32> -> vector<8x32xf32>
    %29 = arith.addf %26, %28 : vector<8x32xf32>
    %c0_19 = arith.constant 0 : index
    %c0_20 = arith.constant 0 : index
    %30 = vector.load %arg12[%c0_19, %c0_20] : memref<8x32xf32, #tpu.memory_space<vmem>>, vector<8x32xf32>
    tpu.vector_store %arg12[%c0_19, %c0_20], %29 {strides = array<i32>} : memref<8x32xf32, #tpu.memory_space<vmem>>, vector<8x32xf32>,
    %c0_21 = arith.constant 0 : index
    %c0_22 = arith.constant 0 : index
    %31 = vector.load %arg10[%c0_21, %c0_22] : memref<8x1xf32, #tpu.memory_space<vmem>>, vector<8x1xf32>
    tpu.vector_store %arg10[%c0_21, %c0_22], %12 {strides = array<i32>} : memref<8x1xf32, #tpu.memory_space<vmem>>, vector<8x1xf32>,
    %c0_i32_23 = arith.constant 0 : i32
    %32 = arith.cmpi eq, %arg2, %c0_i32_23 : i32
    %33 = arith.extui %32 : i1 to i32
    %c0_i32_24 = arith.constant 0 : i32
    %34 = arith.cmpi ne, %33, %c0_i32_24 : i32
    scf.if %34 {
      %c0_25 = arith.constant 0 : index
      %c0_26 = arith.constant 0 : index
      %35 = vector.load %arg12[%c0_25, %c0_26] : memref<8x32xf32, #tpu.memory_space<vmem>>, vector<8x32xf32>
      %c0_27 = arith.constant 0 : index
      %c0_28 = arith.constant 0 : index
      %36 = vector.load %arg11[%c0_27, %c0_28] : memref<8x1xf32, #tpu.memory_space<vmem>>, vector<8x1xf32>
      %37 = vector.broadcast %36 : vector<8x1xf32> to vector<8x32xf32>
      %38 = arith.divf %35, %37 : vector<8x32xf32>
      %c0_29 = arith.constant 0 : index
      %c0_30 = arith.constant 0 : index
      %c0_31 = arith.constant 0 : index
      %39 = vector.load %arg8[%c0_29, %c0_30, %c0_31] : memref<1x8x32xf32, #tpu.memory_space<vmem>>, vector<1x8x32xf32>
      %40 = vector.shape_cast %39 : vector<1x8x32xf32> to vector<8x32xf32>
      %41 = vector.shape_cast %38 : vector<8x32xf32> to vector<1x8x32xf32>
      tpu.vector_store %arg8[%c0_29, %c0_30, %c0_31], %41 {strides = array<i32>} : memref<1x8x32xf32, #tpu.memory_space<vmem>>, vector<1x8x32xf32>,
    } else {
    }
    return
  }
  func.func @transform_0(%arg0: i32, %arg1: i32, %arg2: i32) -> (i32, i32, i32) {
    %c0_i32 = arith.constant 0 : i32
    %c0_i32_0 = arith.constant 0 : i32
    return %arg0, %arg1, %c0_i32 : i32, i32, i32
  }
  func.func @transform_1(%arg0: i32, %arg1: i32, %arg2: i32) -> (i32, i32, i32) {
    %c0_i32 = arith.constant 0 : i32
    %c0_i32_0 = arith.constant 0 : i32
    return %arg0, %arg2, %c0_i32 : i32, i32, i32
  }
  func.func @transform_2(%arg0: i32, %arg1: i32, %arg2: i32) -> (i32, i32, i32) {
    %c0_i32 = arith.constant 0 : i32
    %c0_i32_0 = arith.constant 0 : i32
    return %arg0, %arg2, %c0_i32 : i32, i32, i32
  }
  func.func @transform_3(%arg0: i32, %arg1: i32, %arg2: i32) -> (i32, i32) {
    %c0_i32 = arith.constant 0 : i32
    %c0_i32_0 = arith.constant 0 : i32
    %c0_i32_1 = arith.constant 0 : i32
    return %c0_i32, %c0_i32_0 : i32, i32
  }
  func.func @transform_4(%arg0: i32, %arg1: i32, %arg2: i32) -> (i32, i32) {
    %c0_i32 = arith.constant 0 : i32
    %c0_i32_0 = arith.constant 0 : i32
    %c0_i32_1 = arith.constant 0 : i32
    return %c0_i32, %c0_i32_0 : i32, i32
  }
  func.func @transform_5(%arg0: i32, %arg1: i32, %arg2: i32) -> (i32, i32, i32) {
    %c0_i32 = arith.constant 0 : i32
    %c0_i32_0 = arith.constant 0 : i32
    return %arg0, %arg1, %c0_i32 : i32, i32, i32
  }
}

</mosaic_0001>

<bundles_post_ra>
// kernel: self_attention.2
= control target key start
LH: loop header
LB: loop body
LE: loop exit
PB: predicated region body
PF: predicated region fallthrough
CT: control target
= control target key end

     0   :  { %s607_s21 = smov 0   ;;  %s609_s22 = smov 0   ;;  %s661_s0 = inlined_call_operand.vmem [shape: bf16[2,8,32], index: 0, kind: input, shape index: {}]   ;;  %s662_s1 = inlined_call_operand.vmem [shape: bf16[32,16], index: 1, kind: input, shape index: {}]   ;;  %s663_s2 = inlined_call_operand.vmem [shape: f32[1,16], index: 2, kind: input, shape index: {}]   ;;  %s664_s3 = inlined_call_operand.vmem [shape: bf16[32,32], index: 3, kind: input, shape index: {}]   ;;  %s665_s4 = inlined_call_operand.vmem [shape: f32[1,32], index: 4, kind: input, shape index: {}]   ;;  %s666_s5 = inlined_call_operand.vmem [shape: bf16[2,8,16], index: 5, kind: output, shape index: {0}]   ;;  %s667_s6 = inlined_call_operand.vmem [shape: bf16[2,8,32], index: 6, kind: output, shape index: {1}]  }
   0x1   :  { %s611_s23 = smov 0  }
   0x2 LB: > { %s29_s24 = sadd.s32 1, %s566_s22  ;;  %p494_p0 = scmp.ge.s32.totalorder %s570_s23, 1  ;;  %s570_s23 = sphi %s611_s23, %s17_s23   ;;  %s566_s22 = sphi %s609_s22, %s669_s22   ;;  %s562_s21 = sphi %s607_s21, %s668_s21  }
   0x3   : > { %p31_p1 = scmp.ge.s32.totalorder %s29_s24, 2  ;;  %p235_p2 = scmp.lt.s32.totalorder %s570_s23, 3 }
   0x5   : > { %s671_s24 = smov (%p31_p1, %s29_s24), 0  ;;  %p236_p3 = pnand %p494_p0, %p235_p2 }
   0x6   : > { %p276_p4 = scmp.lt.s32.totalorder (!%p236_p3), %s562_s21, 1 }
   0x7   : > { %239 = sbr.rel (%p236_p3) target bundleno = 155 (0x9b), region = 40 }
   0xc   : > { %v519_v0 = vld [vmem:[%s662_s1 + $0x8] sm:$0xff]  ;;  %v518_v2 = vld [vmem:[%s662_s1] sm:$0xff]  ;;  %s673_s21 = smov (!%p276_p4, %s562_s21), 1  ;;  %vm319_vm0 = vcmask 261120   ;;  %vm370_vm1 = vcmask 125952   ;;  %vm373_vm2 = vcmask 257024  }
   0xd   : > { %v521_v1 = vld [vmem:[%s664_s3 + $0x8] sm:$0xff]  ;;  %329 = vmatpush.bf16.msra.mxu0 %v519_v0  ;;  %v520_v3 = vld [vmem:[%s664_s3] sm:$0xff]  ;;  %s495_s9 = sshll.u32 %s673_s21, 2 }
   0xe   : > { %362 = vmatpush.bf16.msra.mxu1 %v521_v1  ;;  %s282_s12 = scalar_lea.vmem %s661_s0, %s495_s9  ;;  %v546_v5 = vld [vmem:[%s663_s2] ss:$0 sm:$0xff]  ;;  %s289_s19 = scalar_lea.vmem %s666_s5, %s495_s9 }
   0xf   : > { %v298_v4 = vld [vmem:[%s282_s12] sm:$0xf]  ;;  %s296_s25 = scalar_lea.vmem %s667_s6, %s495_s9 }
  0x10   : > { %v547_v6 = vld [vmem:[%s665_s4] ss:$0 sm:$0xff] }
  0x11   : > { %330 = vmatpush.bf16.msra.mxu0 %v518_v2 }
  0x12   : > { %363 = vmatpush.bf16.msra.mxu1 %v520_v3 }
  0x14   : > { %506 = vmatmul.msk.bf16.vlgmr.msra.gmra.mxu0 %vm319_vm0, %v298_v4 }
  0x15   : > { %515 = vmatmul.msk.bf16.vlgmr.msra.gmra.mxu1 %vm319_vm0, %v298_v4 }
  0x91   : > { %v332_v7 = vpop.f32.mrf.mxu0 }
  0x92   : > { %v365_v8 = vpop.f32.mrf.mxu1  ;;  %v333_v9 = vadd.f32 %v546_v5, %v332_v7 }
  0x93   : > { %v366_v10 = vadd.f32 %v547_v6, %v365_v8 }
  0x94   : > { %v369_v11 = vpack.c.bf16 %v333_v9, %v333_v9 }
  0x95   : > { %v372_v12 = vpack.c.bf16 %v366_v10, %v366_v10 }
  0x96   : > { %371 = vst.msk [vmem:[%s289_s19] sm:$0xf] %vm370_vm1, %v369_v11 }
  0x97   : > { %374 = vst.msk [vmem:[%s296_s25] sm:$0xf] %vm373_vm2, %v372_v12 }
  0x99   : > { %v334_v13 = vpop.f32.mrf.mxu0 }
  0x9a   : > { %v367_v14 = vpop.f32.mrf.mxu1 }
  0x9b PF: > { %s17_s23 = sadd.s32 1, %s570_s23   ;;  %s668_s21 = smov %s566_s22 }
  0x9c   : > { %p14_p5 = scmp.ge.s32.totalorder %s17_s23, 4   ;;  %s669_s22 = smov %s671_s24 }
  0x9e   :  { %16 = sbr.rel (!%p14_p5) target bundleno = 2 (0x2), region = 82 }

// kernel: self_attention.3
= control target key start
LH: loop header
LB: loop body
LE: loop exit
PB: predicated region body
PF: predicated region fallthrough
CT: control target
= control target key end

     0   :  { %10 = vsyncpa [#allocation7], 0  ;;  %s920_s0 = inlined_call_operand.vmem [shape: bf16[2,8,32], index: 0, kind: input, shape index: {}]   ;;  %s921_s1 = inlined_call_operand.vmem [shape: bf16[2,8,16], index: 1, kind: input, shape index: {}]   ;;  %s922_s2 = inlined_call_operand.vmem [shape: bf16[2,8,32], index: 2, kind: input, shape index: {}]   ;;  %s923_s3 = inlined_call_operand.vmem [shape: bf16[32,16], index: 3, kind: input, shape index: {}]   ;;  %s924_s4 = inlined_call_operand.vmem [shape: f32[1,16], index: 4, kind: input, shape index: {}]   ;;  %s925_s5 = inlined_call_operand.hbm [shape: f32[2,8,32], index: 5, kind: output, shape index: {}]  }
   0x1   :  { %12 = vsyncpa [#allocation7 + $0x1], 0  ;;  %s792_s18 = smov 0   ;;  %s794_s19 = smov 0  }
   0x2   :  { %s796_s20 = smov 0   ;;  %s798_s21 = smov 0  }
   0x3   :  { %s800_s22 = smov 0   ;;  %s802_s23 = smov 0  }
   0x4 LB: > { %s585_s24 = sadd.s32 4294967295, %s757_s23   ;;  %s586_s25 = sadd.s32 4294967294, %s757_s23   ;;  %s757_s23 = sphi %s802_s23, %s18_s23   ;;  %s753_s22 = sphi %s800_s22, %s932_s22   ;;  %s749_s21 = sphi %s798_s21, %s931_s21   ;;  %s745_s20 = sphi %s796_s20, %s930_s20   ;;  %s741_s19 = sphi %s794_s19, %s929_s19   ;;  %s737_s18 = sphi %s792_s18, %s928_s18  }
   0x5   : > { %s37_s26 = sadd.s32 1, %s753_s22  ;;  %s172_s27 = sadd.s32 1, %s745_s20 }
   0x6   : > { %p39_p0 = scmp.ge.s32.totalorder %s37_s26, 2  ;;  %p182_p1 = scmp.ne.s32.totalorder %s745_s20, %s741_s19 }
   0x7   : > { %p183_p2 = scmp.eq.s32.totalorder %s585_s24, 1  ;;  %p188_p3 = scmp.ne.s32.totalorder %s741_s19, %s737_s18 }
   0x8   : > { %s934_s26 = smov (%p39_p0, %s37_s26), 0  ;;  %p189_p5 = scmp.eq.s32.totalorder %s586_s25, 1 }
   0x9   : > { %p832_p4 = por %p183_p2, %p182_p1  ;;  %s167_s29 = ssub.s32 %s753_s22, %s934_s26 }
   0xa   : > { %p589_p6 = scmp.ge.s32.totalorder %s757_s23, 1  ;;  %p170_p7 = scmp.eq.s32.totalorder %s167_s29, 0 }
   0xb   : > { %p839_p8 = por %p189_p5, %p188_p3  ;;  %p243_p9 = scmp.lt.s32.totalorder %s757_s23, 3 }
   0xc   : > { %s845_s6 = scalar_select %p170_p7, %s745_s20, %s172_s27  }
   0xd   : > { %p244_p10 = pnand %p589_p6, %p243_p9 }
   0xe   : > { %p287_p11 = scmp.lt.s32.totalorder (!%p244_p10), %s749_s21, 1  ;;  %s284_s9 = sand.u32 (!%p244_p10), 1, %s741_s19  }
   0xf   : > { %247 = sbr.rel (%p244_p10) target bundleno = 801 (0x321), region = 40  ;;  %s590_s10 = sshll.u32 (!%p244_p10), %s284_s9, 3 }
  0x10   : > { %s699_s7 = scalar_lea.hbm (!%p244_p10), %s925_s5, 16 }
  0x14   : > { %v610_v0 = vld [vmem:[%s923_s3 + $0x8] sm:$0xff]  ;;  %vm354_vm0 = vcmask 7168   ;;  %vm334_vm1 = vcmask 261120   ;;  %v759_v1 = vmov 0.0   ;;  %v609_v2 = vld [vmem:[%s923_s3] sm:$0xff]  ;;  %s288_s11 = scalar_select %p287_p11, %s749_s21, 1 }
  0x15   : > { %356 = vst.msk [vmem:[#allocation4] sm:$0xff] %vm354_vm0, %v759_v1  ;;  %344 = vmatpush.bf16.msra.mxu0 %v610_v0  ;;  %vm361_vm2 = vcmask 130048   ;;  %v672_v6 = vld [vmem:[%s924_s4] ss:$0 sm:$0xff]  ;;  %vm352_vm3 = vcmask 125952   ;;  %v760_v12 = vmov -inf  }
  0x16   : > { %357 = vst.msk [vmem:[#allocation5] sm:$0xff] %vm334_vm1, %v759_v1  ;;  %s857_s12 = sshll.u32 %s288_s11, 2  ;;  %vm382_vm4 = vcmask 64512   ;;  %v761_v16 = vmov 0   ;;  %vm417_vm5 = vcmask 1043456   ;;  %s606_s11 = sshll.u32 %s749_s21, 3 }
  0x17   : > { %s293_s15 = scalar_lea.vmem %s920_s0, %s857_s12  ;;  %s300_s24 = scalar_lea.vmem %s921_s1, %s857_s12  ;;  %355 = vst.msk [vmem:[#allocation3] sm:$0xff] %vm354_vm0, %v760_v12  ;;  %669 = vset.pattern.permute.xlu0 %v761_v16  ;;  %671 = vset.pattern.permute.xlu2 %v761_v16 }
  0x18   : > { %v313_v3 = vld [vmem:[%s293_s15] sm:$0xf]  ;;  %670 = vset.pattern.permute.xlu1 %v761_v16  ;;  %s307_s8 = scalar_lea.vmem %s922_s2, %s857_s12  ;;  %s476_s14 = scalar_lea.hbm %s925_s5, %s606_s11 }
  0x19   : > { %345 = vmatpush.bf16.msra.mxu0 %v609_v2  ;;  %v358_v4 = vld [vmem:[%s300_s24] sm:$0xf]  ;;  %s286_s15 = scalar_lea.vmem [#allocation6], %s590_s10  ;;  %s480_s17 = sshll.u32 %s476_s14, 4  ;;  %s481_s17 = int_to_ptr.hbm [resolvable:$true] %s480_s17 }
  0x1a   : > { %v366_v5 = vsel %vm361_vm2, %v358_v4, 0  ;;  %v359_v23 = vld [vmem:[%s307_s8] sm:$0xf]  ;;  %s478_s16 = sshll.u32 %s286_s15, 4  ;;  %s465_s21 = scalar_lea.sflag [#allocation7], %s284_s9  ;;  %s479_s16 = int_to_ptr.vmem [resolvable:$true] %s478_s16 }
  0x1b   : > { %375 = vmatpush.bf16.xpose.msra.mxu1 %v366_v5  ;;  %v419_v24 = vsel %vm417_vm5, %v359_v23, 0  ;;  %s693_s24 = sshra.s32 %s481_s17, 4  ;;  %s694_s24 = int_to_ptr.hbm [resolvable:$true] %s693_s24 }
  0x1c   : > { %602 = vmatmul.msk.bf16.vlgmr.msra.gmra.mxu0 %vm334_vm1, %v313_v3  ;;  %428 = vmatpush.bf16.msra.mxu2 %v419_v24  ;;  %v398_v31 = vld [vmem:[#allocation4] sm:$0xff]  ;;  %s695_s25 = scalar_lea.hbm %s694_s24, 8  ;;  %p700_p1 = scmp.lt.s32.totalorder %s694_s24, %s925_s5 }
  0x1d   : > { %v406_v36 = vld [vmem:[#allocation5] sm:$0xff]  ;;  %p696_p12 = scmp.ne.s32.totalorder %s694_s24, %s695_s25  ;;  %p701_p2 = scmp.lt.s32.totalorder %s699_s7, %s695_s25 }
  0x1e   : > { %v381_v17 = vld [vmem:[#allocation3] sm:$0xff] }
  0x1f   : > { %p697_p13 = pnand %p696_p12, %p832_p4  ;;  %p702_p3 = por %p701_p2, %p700_p1 }
  0x21   : > { %p698_p0 = pneg %p697_p13 }
  0x23   : > { %p703_p5 = pnand %p702_p3, %p698_p0 }
  0x99   : > { %v347_v7 = vpop.f32.mrf.mxu0 }
  0x9a   : > { %v348_v8 = vadd.f32 %v672_v6, %v347_v7 }
  0x9c   : > { %v351_v9 = vpack.c.bf16 %v348_v8, %v348_v8 }
  0x9e   : > { %353 = vst.msk [vmem:[#allocation2] sm:$0xf] %vm352_vm3, %v351_v9 }
  0xa1   : > { %v349_v10 = vpop.f32.mrf.mxu0 }
  0xa5   : > { %v360_v11 = vld [vmem:[#allocation2] sm:$0xf] }
  0xa6   : > { %603 = vmatmul.msk.bf16.vlgmr.msra.gmra.mxu1 %vm361_vm2, %v360_v11 }
 0x123   : > { %v377_v13 = vpop.f32.mrf.mxu1 }
 0x124   : > { %v383_v14 = vsel %vm382_vm4, %v377_v13, -inf }
 0x125   : > { %384 = vmax.xlane.f32.xlu0 %v383_v14 }
 0x12b   : > { %v379_v15 = vpop.f32.mrf.mxu1 }
 0x198   : > { %v385_v18 = vpop.xlane.xlu0 %384 }
 0x199   : > { %v386_v19 = vmax.f32 %v381_v17, %v385_v18 }
 0x19b   : > { %v387_v20 = vsub.f32 %v381_v17, %v386_v19  ;;  %437 = vst.msk [vmem:[#allocation3] sm:$0xff] %vm354_vm0, %v386_v19  ;;  %392 = vperm.xlu0 %669, %v386_v19  }
 0x19d   : > { %v388_v21 = vmul.f32 1.442695, %v387_v20 }
 0x19f   : > { %673 = vpow2.f32 %v388_v21 }
 0x1a5   : > { %v674_v22 = vpop.eup %673 }
 0x1a6   : > { %409 = vperm.xlu2 %671, %v674_v22   ;;  %v399_v32 = vmul.f32 %v674_v22, %v398_v31 }
 0x200   : > { %v410_v37 = vpop.permute.xlu2 %409 }
 0x201   : > { %v412_v38 = vmul.f32 %v410_v37, %v406_v36 }
 0x20d   : > { %v393_v25 = vpop.permute.xlu0 %392 }
 0x20e   : > { %v395_v26 = vsub.f32 %v377_v13, %v393_v25 }
 0x210   : > { %v396_v27 = vmul.f32 1.442695, %v395_v26 }
 0x212   : > { %675 = vpow2.f32 %v396_v27 }
 0x218   : > { %v676_v28 = vpop.eup %675 }
 0x219   : > { %v400_v29 = vsel %vm382_vm4, %v676_v28, 0.0  ;;  %v413_v30 = vpack.c.bf16 %v676_v28, %v676_v28 }
 0x21a   : > { %401 = vadd.xlane.f32.xlu1 %v400_v29 }
 0x21b   : > { %604 = vmatmul.msk.bf16.vlgmr.msra.gmra.mxu2 %vm382_vm4, %v413_v30 }
 0x28d   : > { %v402_v33 = vpop.xlane.xlu1 %401 }
 0x28e   : > { %v403_v34 = vadd.f32 %v402_v33, %v399_v32 }
 0x290   : > { %405 = vst.msk [vmem:[#allocation4] sm:$0xff] %vm354_vm0, %v403_v34 }
 0x297   : > { %v442_v35 = vld [vmem:[#allocation4] sm:$0xff] }
 0x298   : > { %445 = vperm.xlu1 %670, %v442_v35  }
 0x29e   : > { %v430_v39 = vpop.f32.mrf.mxu2 }
 0x29f   : > { %v434_v40 = vadd.f32 %v430_v39, %v412_v38 }
 0x2a1   : > { %436 = vst.msk [vmem:[#allocation5] sm:$0xff] %vm334_vm1, %v434_v40 }
 0x2a6   : > { %v432_v41 = vpop.f32.mrf.mxu2 }
 0x2a8   : > { %v441_v53 = vld [vmem:[#allocation5] sm:$0xff] }
 0x30a   : > { %v446_v42 = vpop.permute.xlu1 %445 }
 0x30b   : > { %677 = vrcp.f32 %v446_v42  ;;  %v459_v46 = vand.u32 2147483648, %v446_v42  ;;  %v457_v48 = vand.u32 2147483647, %v446_v42  ;;  %vm453_vm7 = vweird.f32 %v446_v42 }
 0x30d   : > { %v460_v50 = vor.u32 1.1754944e-38, %v459_v46  ;;  %vm458_vm9 = vcmp.eq.f32.partialorder %v457_v48, 8.507059e+37 }
 0x311   : > { %v678_v43 = vpop.eup %677 }
 0x312   : > { %v449_v44 = vmul.f32 %v678_v43, %v446_v42  ;;  %vm454_vm6 = vweird.f32 %v678_v43 }
 0x313   : > { %vm455_vm8 = vmor %vm453_vm7, %vm454_vm6 }
 0x314   : > { %v450_v45 = vsub.f32 1.0, %v449_v44 }
 0x316   : > { %v451_v47 = vmul.f32 %v678_v43, %v450_v45 }
 0x318   : > { %v452_v49 = vadd.f32 %v678_v43, %v451_v47 }
 0x31a   : > { %v456_v51 = vsel %vm455_vm8, %v678_v43, %v452_v49 }
 0x31b   : > { %v461_v52 = vsel %vm458_vm9, %v460_v50, %v456_v51 }
 0x31c   : > { %v462_v54 = vmul.f32 %v461_v52, %v441_v53 }
 0x31e   : > { %463 = vst.msk [vmem:[%s286_s15] sm:$0xff] %vm334_vm1, %v462_v54 }
 0x31f   : > { %706 = shalt.err (!%p703_p5)
}
 0x320   : > { %611 = dma.vmem_to_hbm [thread:$0]  (%p832_p4), %s479_s16, 128, %s481_s17, %s465_s21  }
 0x321 PF: > { %p617_p6 = scmp.ge.s32.totalorder %s757_s23, 2  ;;  %s492_s9 = sand.u32 1, %s737_s18  }
 0x322   : > { %s493_s11 = scalar_lea.sflag [#allocation7], %s492_s9 }
 0x323   : > { %p614_p7 = pnand %p617_p6, %p839_p8 }
 0x325   : > { %p615_p9 = pneg %p614_p7 }
 0x327   : > { %732 = dma.done.wait (%p615_p9), %s493_s11, 128  }
 0x328   : > { %734 = vsyncadd (%p615_p9), %s493_s11, 4294967168  ;;  %s18_s23 = sadd.s32 1, %s757_s23   ;;  %s928_s18 = smov %s741_s19 }
 0x329   : > { %p15_p10 = scmp.ge.s32.totalorder %s18_s23, 4   ;;  %s929_s19 = smov %s745_s20 }
 0x32a   : > { %s930_s20 = smov %s845_s6  ;;  %s931_s21 = smov %s753_s22 }
 0x32b   : > { %s932_s22 = smov %s934_s26  ;;  %17 = sbr.rel (!%p15_p10) target bundleno = 4 (0x4), region = 89 }
 0x330   :  { %499 = vsyncpa [#allocation7], 1 }
 0x331   :  { %501 = vsyncpa [#allocation7 + $0x1], 1 }

</bundles_post_ra>
